<compile_context>
chip_gen: v6e
topology: v6e:2x2x1
jax: 0.10.0
libtpu: 0.0.40
codegen_flags: <defaults>
</compile_context>

<pallas_src>
import functools

import jax
import jax.numpy as jnp
from jax.experimental import pallas as pl
from jax.experimental.pallas import tpu as pltpu

LANE = 128
_VMEM_LIMIT_BYTES = 40 * 1024 * 1024   # > 16/32 MiB scoped defaults, < v7x 64 MiB physical


# ----------------------------- in-kernel helpers ------------------------------

def _two_class_core(x_ref):
    """Shared 2-channel softmax algebra: d = x1 - x0, e = exp(-|d|), 1 + e.

    One exp per voxel feeds both the sigmoid prediction and the softplus loss
    (the naive form needs 2 exps + 1 log + divides).
    """
    x0 = x_ref[0].astype(jnp.float32)
    x1 = x_ref[1].astype(jnp.float32)
    d = x1 - x0
    e = jnp.exp(-jnp.abs(d))
    return d, e, 1.0 + e


def _write_prediction(p_ref, d, e, one_plus_e):
    """prediction = 2-class softmax == numerically-stable sigmoid of the logit diff."""
    inv = pl.reciprocal(one_plus_e, approx=False)    # exact; one recip + one mul
    p_small = e * inv
    pos = d >= 0.0
    p_ref[0] = jnp.where(pos, p_small, inv).astype(p_ref.dtype)
    p_ref[1] = jnp.where(pos, inv, p_small).astype(p_ref.dtype)


def _loss_elements(y_ref, d, one_plus_e):
    """Per-voxel weighted CE with the global 0.2 factor folded out (wrapper re-applies)."""
    lg = jnp.log(one_plus_e)              # == log_sum_exp - max == log(1 + exp(-|d|))
    sp_pos = jnp.maximum(d, 0.0) + lg     # log_sum_exp - adj[:,0]  (softplus(d))
    sp_neg = sp_pos - d                   # log_sum_exp - adj[:,1]  (softplus(-d))
    if y_ref.shape[0] == 2:               # full two-channel labels
        y0 = y_ref[0].astype(jnp.float32)
        y1 = y_ref[1].astype(jnp.float32)
    else:                                 # occupancy-only labels: y0 = 1 - y1
        y1 = y_ref[0].astype(jnp.float32)
        y0 = 1.0 - y1
    return y0 * sp_pos + 4.0 * y1 * sp_neg   # == (0.2*y0*sp_pos + 0.8*y1*sp_neg) / 0.2


def _mask_tail(lelem, rn):
    """Zero rows past the true row count (cdiv tail block / split-overflow blocks)."""
    tile_r, lanes = lelem.shape
    b_raw = pl.program_id(1) * pl.num_programs(2) + pl.program_id(2)
    remaining = rn - b_raw * tile_r       # <= 0 for fully-overflow (clamped) blocks
    row_ids = jax.lax.broadcasted_iota(jnp.int32, (tile_r, lanes), 0)
    return jnp.where(row_ids < remaining, lelem, 0.0)


def _accum_loss(loss_ref, lelem):
    """Accumulate a (tile_r, 128) element-loss tile into the resident (8, 128) block."""
    r = lelem.shape[0]
    if r % 8 == 0:
        # VALU-only partial reduction: (tile_r,128) -> (8,128) via strided vreg adds.
        loss_ref[...] += jnp.sum(lelem.reshape(r // 8, 8, LANE), axis=0)
    else:
        # Rare small-volume fallback (tile_r == Rn, Rn % 8 != 0): full sublane reduce,
        # spread evenly over the 8 rows (x * 1/8 is exact in fp, total sum unchanged).
        loss_ref[...] += jnp.sum(lelem, axis=0, keepdims=True) * 0.125


# ------------------------------- kernel bodies --------------------------------

def _kernel_pred_loss(x_ref, y_ref, p_ref, loss_ref, *, rn, need_mask):
    """test=True with labels: softmax prediction + weighted-CE loss accumulation."""
    @pl.when(pl.program_id(2) == 0)
    def _():
        loss_ref[...] = jnp.zeros_like(loss_ref)

    d, e, one_plus_e = _two_class_core(x_ref)
    _write_prediction(p_ref, d, e, one_plus_e)
    lelem = _loss_elements(y_ref, d, one_plus_e)
    if need_mask:
        lelem = _mask_tail(lelem, rn)
    _accum_loss(loss_ref, lelem)


def _kernel_loss_only(x_ref, y_ref, loss_ref, *, rn, need_mask):
    """test=False: loss only -- no prediction writeback, no reciprocal."""
    @pl.when(pl.program_id(2) == 0)
    def _():
        loss_ref[...] = jnp.zeros_like(loss_ref)

    d, _, one_plus_e = _two_class_core(x_ref)
    lelem = _loss_elements(y_ref, d, one_plus_e)
    if need_mask:
        lelem = _mask_tail(lelem, rn)
    _accum_loss(loss_ref, lelem)


def _kernel_pred_only(x_ref, p_ref):
    """test=True, y is None: softmax prediction only -- no label reads, no loss."""
    d, e, one_plus_e = _two_class_core(x_ref)
    _write_prediction(p_ref, d, e, one_plus_e)


# ------------------------------- wrapper --------------------------------------

def weight_softmax_with_loss_3d(inputs, y=None, test=False, tile_rows=1024, pred_dtype=None):
    """Mirror of WeightSoftmaxWithLoss3D.forward (Pallas TPU).

    inputs:     (N, 2, D, H, W), any float dtype (cast to f32 in-kernel).
    y:          optional labels: (N, 2, D, H, W) full two-channel labels, or
                (N, 1, D, H, W) / (N, D, H, W) occupancy-only labels (y0 = 1 - y1),
                which streams ~25% fewer HBM bytes in the train path.
    pred_dtype: dtype of the returned prediction (default: inputs.dtype).
                NOTE: the PyTorch reference returns f32 probabilities; pass jnp.float32
                explicitly if inputs are bf16 and f32 predictions are required.
    """
    if not isinstance(test, bool):
        raise Exception('keyword argument "test" needs to be a bool type')
    if (test is False) and (y is None):
        raise Exception('"y is None" and "test is False" cannot happen at the same time')

    N, C, D, H, W = inputs.shape
    assert C == 2, "WeightSoftmaxWithLoss3D expects exactly 2 channels"
    S = D * H * W
    assert S % LANE == 0, "D*H*W must be a multiple of 128 for this kernel"
    Rn = S // LANE                          # rows per (sample, channel) plane
    total = N * S
    pred_dtype = inputs.dtype if pred_dtype is None else jnp.dtype(pred_dtype)

    # Bounded row tiles: at most tile_rows rows (mult of 8); cdiv grid + in-kernel tail mask
    # keeps every shape on large tiles instead of degenerating to tiny divisors or emitting
    # an unbounded full-extent block.
    tile_rows = max(8, (int(tile_rows) // 8) * 8)
    tile_r = Rn if Rn <= tile_rows else tile_rows
    total_blocks = pl.cdiv(Rn, tile_r)

    x4 = inputs.reshape(N, 2, Rn, LANE)     # free reshape: trailing dims collapse contiguously
    x_bytes = N * 2 * S * jnp.dtype(inputs.dtype).itemsize
    pred_bytes = N * 2 * S * jnp.dtype(pred_dtype).itemsize
    n_vox = N * S

    want_pred = test
    want_loss = y is not None

    # ------------------- prediction-only (test=True, y is None) -------------------
    if want_pred and not want_loss:
        blk = pl.BlockSpec((None, 2, tile_r, LANE), lambda n, i: (n, 0, i, 0))
        pred4 = pl.pallas_call(
            _kernel_pred_only,
            out_shape=jax.ShapeDtypeStruct((N, 2, Rn, LANE), pred_dtype),
            grid_spec=pltpu.PrefetchScalarGridSpec(
                num_scalar_prefetch=0, grid=(N, total_blocks),
                in_specs=[blk], out_specs=blk),
            compiler_params=pltpu.CompilerParams(
                dimension_semantics=("parallel", "parallel"),
                vmem_limit_bytes=_VMEM_LIMIT_BYTES),
            cost_estimate=pl.CostEstimate(
                flops=8 * n_vox, transcendentals=2 * n_vox,
                bytes_accessed=x_bytes + pred_bytes),
        )(x4)
        return [pred4.reshape(N, 2, D, H, W)]

    # ------------------------------ loss paths -------------------------------------
    if y.ndim == 4:                         # (N, D, H, W) occupancy-only labels
        y = y[:, None]
    YC = y.shape[1]
    assert y.shape == (N, YC, D, H, W) and YC in (1, 2), "bad label shape"
    y4 = y.reshape(N, YC, Rn, LANE)
    y_bytes = N * YC * S * jnp.dtype(y.dtype).itemsize

    # Split the spatial reduction two ways so both v7x TensorCores stay busy even at N == 1;
    # a no-op on single-core v5e/v6e.
    n_split = 2 if total_blocks >= 2 else 1
    n_inner = pl.cdiv(total_blocks, n_split)
    need_mask = (total_blocks * tile_r != Rn) or (n_split * n_inner != total_blocks)
    grid = (N, n_split, n_inner)

    if n_split * n_inner == total_blocks:
        def _row_block(n, s, i):
            return (n, 0, s * n_inner + i, 0)
    else:
        # Clamp the (at most one) overflow step onto the last real block; its loss
        # contribution is zeroed by the tail mask and its prediction rewrite is identical.
        def _row_block(n, s, i):
            return (n, 0, jnp.minimum(s * n_inner + i, total_blocks - 1), 0)

    x_blk = pl.BlockSpec((None, 2, tile_r, LANE), _row_block)
    y_blk = pl.BlockSpec((None, YC, tile_r, LANE), _row_block)
    pred_blk = pl.BlockSpec((None, 2, tile_r, LANE), _row_block)
    loss_blk = pl.BlockSpec((None, None, 8, LANE), lambda n, s, i: (n, s, 0, 0))

    loss_shape = jax.ShapeDtypeStruct((N, n_split, 8, LANE), jnp.float32)
    loss_bytes = N * n_split * 8 * LANE * 4
    cparams = pltpu.CompilerParams(
        dimension_semantics=("parallel", "parallel", "arbitrary"),
        vmem_limit_bytes=_VMEM_LIMIT_BYTES)

    if want_pred:
        pred_shape = jax.ShapeDtypeStruct((N, 2, Rn, LANE), pred_dtype)
        pred4, loss_part = pl.pallas_call(
            functools.partial(_kernel_pred_loss, rn=Rn, need_mask=need_mask),
            out_shape=(pred_shape, loss_shape),
            grid_spec=pltpu.PrefetchScalarGridSpec(
                num_scalar_prefetch=0, grid=grid,
                in_specs=[x_blk, y_blk],
                out_specs=[pred_blk, loss_blk]),
            compiler_params=cparams,
            cost_estimate=pl.CostEstimate(
                flops=14 * n_vox, transcendentals=3 * n_vox,
                bytes_accessed=x_bytes + y_bytes + pred_bytes + loss_bytes),
        )(x4, y4)
        prediction = pred4.reshape(N, 2, D, H, W)
        loss = 0.2 * jnp.sum(loss_part) / jnp.float32(total)   # re-apply folded weight
        return [prediction, loss]

    # train mode: loss only, no prediction stream written to HBM
    loss_part = pl.pallas_call(
        functools.partial(_kernel_loss_only, rn=Rn, need_mask=need_mask),
        out_shape=loss_shape,
        grid_spec=pltpu.PrefetchScalarGridSpec(
            num_scalar_prefetch=0, grid=grid,
            in_specs=[x_blk, y_blk],
            out_specs=loss_blk),
        compiler_params=cparams,
        cost_estimate=pl.CostEstimate(
            flops=10 * n_vox, transcendentals=2 * n_vox,
            bytes_accessed=x_bytes + y_bytes + loss_bytes),
    )(x4, y4)
    return 0.2 * jnp.sum(loss_part) / jnp.float32(total)


# ------------------------------ reference & test -------------------------------

def _reference(inputs, y):
    """Pure-JAX reference of the PyTorch forward."""
    x = inputs.astype(jnp.float32)
    yy = y.astype(jnp.float32)
    m = jnp.max(x, axis=1, keepdims=True)
    adj = x - m
    e = jnp.exp(adj)
    s = jnp.sum(e, axis=1)                       # (N, D, H, W)
    log_s = jnp.log(s)
    loss = jnp.mean(0.2 * yy[:, 0] * (-adj[:, 0] + log_s)
                    + 0.8 * yy[:, 1] * (-adj[:, 1] + log_s))
    pred = e / s[:, None]
    return pred, loss


def _make_case(key, N, D, H, W):
    k1, k2 = jax.random.split(key)
    x = jax.random.normal(k1, (N, 2, D, H, W), dtype=jnp.float32) * 3.0
    occ = (jax.random.uniform(k2, (N, 1, D, H, W)) > 0.5).astype(jnp.float32)
    y = jnp.concatenate([1.0 - occ, occ], axis=1)        # one-hot occupancy labels
    return x, y, occ


if __name__ == "__main__":
    key = jax.random.PRNGKey(0)
    k_a, k_b, k_c = jax.random.split(key, 3)

    # --- Main shape: (2, 2, 16, 16, 16) -> 32 rows/plane, single full tile -----------------
    inputs, y, occ = _make_case(k_a, 2, 16, 16, 16)
    ref_pred, ref_loss = _reference(inputs, y)

    prediction, loss = weight_softmax_with_loss_3d(inputs, y=y, test=True)
    jax.block_until_ready(prediction)
    jax.block_until_ready(loss)
    assert jnp.allclose(prediction, ref_pred, rtol=1e-5, atol=1e-6), "prediction mismatch"
    assert jnp.allclose(loss, ref_loss, rtol=2e-5, atol=1e-6), "loss mismatch"

    loss_train = weight_softmax_with_loss_3d(inputs, y=y, test=False)
    jax.block_until_ready(loss_train)
    assert jnp.allclose(loss_train, ref_loss, rtol=2e-5, atol=1e-6), "train loss mismatch"

    (pred_only,) = weight_softmax_with_loss_3d(inputs, y=None, test=True)
    jax.block_until_ready(pred_only)
    assert jnp.allclose(pred_only, ref_pred, rtol=1e-5, atol=1e-6), "pred-only mismatch"

    # occupancy-only label stream (single label channel, fewer HBM bytes)
    loss_occ = weight_softmax_with_loss_3d(inputs, y=occ, test=False)
    jax.block_until_ready(loss_occ)
    assert jnp.allclose(loss_occ, ref_loss, rtol=2e-5, atol=1e-6), "occ-label loss mismatch"

    # --- Tail mask + split overflow: 40 rows/plane, forced 16-row tiles (3 blocks, 2 splits) -
    x2, y2, _ = _make_case(k_b, 2, 16, 16, 20)
    rp2, rl2 = _reference(x2, y2)
    p2, l2 = weight_softmax_with_loss_3d(x2, y=y2, test=True, tile_rows=16)
    jax.block_until_ready(p2)
    jax.block_until_ready(l2)
    assert jnp.allclose(p2, rp2, rtol=1e-5, atol=1e-6), "tail-mask prediction mismatch"
    assert jnp.allclose(l2, rl2, rtol=2e-5, atol=1e-6), "tail-mask loss mismatch"

    # --- Rn not a multiple of 8 (broadcast-accumulate fallback): 8*12*12 -> 9 rows/plane ----
    x3, y3, _ = _make_case(k_c, 2, 8, 12, 12)
    rp3, rl3 = _reference(x3, y3)
    p3, l3 = weight_softmax_with_loss_3d(x3, y=y3, test=True)
    jax.block_until_ready(p3)
    jax.block_until_ready(l3)
    assert jnp.allclose(p3, rp3, rtol=1e-5, atol=1e-6), "odd-Rn prediction mismatch"
    assert jnp.allclose(l3, rl3, rtol=2e-5, atol=1e-6), "odd-Rn loss mismatch"

    print("KERNEL_OK")
</pallas_src>

<mosaic_0001>
module attributes {stable_mosaic.version = 11 : i64} {
  func.func @_kernel_pred_loss(%arg0: i32, %arg1: i32, %arg2: i32, %arg3: memref<1x2x32x128xf32, #tpu.memory_space<vmem>>, %arg4: memref<1x2x32x128xf32, #tpu.memory_space<vmem>>, %arg5: memref<1x2x32x128xf32, #tpu.memory_space<vmem>>, %arg6: memref<1x1x8x128xf32, #tpu.memory_space<vmem>>) attributes {dimension_semantics = [#tpu.dimension_semantics<parallel>, #tpu.dimension_semantics<parallel>, #tpu.dimension_semantics<arbitrary>], iteration_bounds = array<i64: 2, 1, 1>, scalar_prefetch = 0 : i64, scratch_operands = 0 : i64, tpu.core_type = #tpu.core_type<tc>, window_params = [{transform_indices = @transform_0, window_bounds = array<i64: 1, 2, 32, 128>}, {transform_indices = @transform_1, window_bounds = array<i64: 1, 2, 32, 128>}, {transform_indices = @transform_2, window_bounds = array<i64: 1, 2, 32, 128>}, {transform_indices = @transform_3, window_bounds = array<i64: 1, 1, 8, 128>}]} {
    %c0_i32 = arith.constant 0 : i32
    %0 = arith.cmpi eq, %arg2, %c0_i32 : i32
    %1 = arith.extui %0 : i1 to i32
    %c0_i32_0 = arith.constant 0 : i32
    %2 = arith.cmpi ne, %1, %c0_i32_0 : i32
    scf.if %2 {
      %cst_36 = arith.constant 0.000000e+00 : f32
      %48 = vector.broadcast %cst_36 : f32 to vector<8x128xf32>
      %c0_37 = arith.constant 0 : index
      %c0_38 = arith.constant 0 : index
      %c0_39 = arith.constant 0 : index
      %c0_40 = arith.constant 0 : index
      %49 = vector.load %arg6[%c0_37, %c0_38, %c0_39, %c0_40] : memref<1x1x8x128xf32, #tpu.memory_space<vmem>>, vector<1x1x8x128xf32>
      %50 = vector.shape_cast %49 : vector<1x1x8x128xf32> to vector<8x128xf32>
      %51 = vector.shape_cast %48 : vector<8x128xf32> to vector<1x1x8x128xf32>
      tpu.vector_store %arg6[%c0_37, %c0_38, %c0_39, %c0_40], %51 {strides = array<i32>} : memref<1x1x8x128xf32, #tpu.memory_space<vmem>>, vector<1x1x8x128xf32>,
    } else {
    }
    %c0 = arith.constant 0 : index
    %c0_1 = arith.constant 0 : index
    %c0_2 = arith.constant 0 : index
    %c0_3 = arith.constant 0 : index
    %3 = vector.load %arg3[%c0, %c0_1, %c0_2, %c0_3] : memref<1x2x32x128xf32, #tpu.memory_space<vmem>>, vector<1x1x32x128xf32>
    %4 = vector.shape_cast %3 : vector<1x1x32x128xf32> to vector<32x128xf32>
    %c0_4 = arith.constant 0 : index
    %c1 = arith.constant 1 : index
    %c0_5 = arith.constant 0 : index
    %c0_6 = arith.constant 0 : index
    %5 = vector.load %arg3[%c0_4, %c1, %c0_5, %c0_6] : memref<1x2x32x128xf32, #tpu.memory_space<vmem>>, vector<1x1x32x128xf32>
    %6 = vector.shape_cast %5 : vector<1x1x32x128xf32> to vector<32x128xf32>
    %7 = arith.subf %6, %4 : vector<32x128xf32>
    %8 = math.absf %7 : vector<32x128xf32>
    %cst = arith.constant 0.000000e+00 : f32
    %9 = vector.broadcast %cst : f32 to vector<32x128xf32>
    %10 = arith.subf %9, %8 : vector<32x128xf32>
    %11 = math.exp %10 : vector<32x128xf32>
    %cst_7 = arith.constant 1.000000e+00 : f32
    %12 = vector.broadcast %cst_7 : f32 to vector<32x128xf32>
    %13 = arith.addf %12, %11 : vector<32x128xf32>
    %14 = tpu.reciprocal %13 : vector<32x128xf32> -> vector<32x128xf32>
    %15 = arith.mulf %11, %14 : vector<32x128xf32>
    %cst_8 = arith.constant 0.000000e+00 : f32
    %16 = vector.broadcast %cst_8 : f32 to vector<32x128xf32>
    %17 = arith.cmpf oge, %7, %16 : vector<32x128xf32>
    %18 = arith.select %17, %15, %14 : vector<32x128xi1>, vector<32x128xf32>
    %c0_9 = arith.constant 0 : index
    %c0_10 = arith.constant 0 : index
    %c0_11 = arith.constant 0 : index
    %c0_12 = arith.constant 0 : index
    %19 = vector.load %arg5[%c0_9, %c0_10, %c0_11, %c0_12] : memref<1x2x32x128xf32, #tpu.memory_space<vmem>>, vector<1x1x32x128xf32>
    %20 = vector.shape_cast %19 : vector<1x1x32x128xf32> to vector<32x128xf32>
    %21 = vector.shape_cast %18 : vector<32x128xf32> to vector<1x1x32x128xf32>
    tpu.vector_store %arg5[%c0_9, %c0_10, %c0_11, %c0_12], %21 {strides = array<i32>} : memref<1x2x32x128xf32, #tpu.memory_space<vmem>>, vector<1x1x32x128xf32>,
    %22 = arith.select %17, %14, %15 : vector<32x128xi1>, vector<32x128xf32>
    %c0_13 = arith.constant 0 : index
    %c1_14 = arith.constant 1 : index
    %c0_15 = arith.constant 0 : index
    %c0_16 = arith.constant 0 : index
    %23 = vector.load %arg5[%c0_13, %c1_14, %c0_15, %c0_16] : memref<1x2x32x128xf32, #tpu.memory_space<vmem>>, vector<1x1x32x128xf32>
    %24 = vector.shape_cast %23 : vector<1x1x32x128xf32> to vector<32x128xf32>
    %25 = vector.shape_cast %22 : vector<32x128xf32> to vector<1x1x32x128xf32>
    tpu.vector_store %arg5[%c0_13, %c1_14, %c0_15, %c0_16], %25 {strides = array<i32>} : memref<1x2x32x128xf32, #tpu.memory_space<vmem>>, vector<1x1x32x128xf32>,
    %26 = math.log %13 : vector<32x128xf32>
    %cst_17 = arith.constant 0.000000e+00 : f32
    %27 = vector.broadcast %cst_17 : f32 to vector<32x128xf32>
    %28 = arith.maximumf %7, %27 : vector<32x128xf32>
    %29 = arith.addf %28, %26 : vector<32x128xf32>
    %30 = arith.subf %29, %7 : vector<32x128xf32>
    %c0_18 = arith.constant 0 : index
    %c0_19 = arith.constant 0 : index
    %c0_20 = arith.constant 0 : index
    %c0_21 = arith.constant 0 : index
    %31 = vector.load %arg4[%c0_18, %c0_19, %c0_20, %c0_21] : memref<1x2x32x128xf32, #tpu.memory_space<vmem>>, vector<1x1x32x128xf32>
    %32 = vector.shape_cast %31 : vector<1x1x32x128xf32> to vector<32x128xf32>
    %c0_22 = arith.constant 0 : index
    %c1_23 = arith.constant 1 : index
    %c0_24 = arith.constant 0 : index
    %c0_25 = arith.constant 0 : index
    %33 = vector.load %arg4[%c0_22, %c1_23, %c0_24, %c0_25] : memref<1x2x32x128xf32, #tpu.memory_space<vmem>>, vector<1x1x32x128xf32>
    %34 = vector.shape_cast %33 : vector<1x1x32x128xf32> to vector<32x128xf32>
    %35 = arith.mulf %32, %29 : vector<32x128xf32>
    %cst_26 = arith.constant 4.000000e+00 : f32
    %36 = vector.broadcast %cst_26 : f32 to vector<32x128xf32>
    %37 = arith.mulf %36, %34 : vector<32x128xf32>
    %38 = arith.mulf %37, %30 : vector<32x128xf32>
    %39 = arith.addf %35, %38 : vector<32x128xf32>
    %c0_27 = arith.constant 0 : index
    %c0_28 = arith.constant 0 : index
    %c0_29 = arith.constant 0 : index
    %c0_30 = arith.constant 0 : index
    %40 = vector.load %arg6[%c0_27, %c0_28, %c0_29, %c0_30] : memref<1x1x8x128xf32, #tpu.memory_space<vmem>>, vector<1x1x8x128xf32>
    %41 = vector.shape_cast %40 : vector<1x1x8x128xf32> to vector<8x128xf32>
    %42 = vector.shape_cast %39 : vector<32x128xf32> to vector<4x8x128xf32>
    %cst_31 = arith.constant dense<0.000000e+00> : vector<8x128xf32>
    %43 = vector.multi_reduction <add>, %42, %cst_31 [0] : vector<4x8x128xf32> to vector<8x128xf32>
    %44 = arith.addf %41, %43 : vector<8x128xf32>
    %c0_32 = arith.constant 0 : index
    %c0_33 = arith.constant 0 : index
    %c0_34 = arith.constant 0 : index
    %c0_35 = arith.constant 0 : index
    %45 = vector.load %arg6[%c0_32, %c0_33, %c0_34, %c0_35] : memref<1x1x8x128xf32, #tpu.memory_space<vmem>>, vector<1x1x8x128xf32>
    %46 = vector.shape_cast %45 : vector<1x1x8x128xf32> to vector<8x128xf32>
    %47 = vector.shape_cast %44 : vector<8x128xf32> to vector<1x1x8x128xf32>
    tpu.vector_store %arg6[%c0_32, %c0_33, %c0_34, %c0_35], %47 {strides = array<i32>} : memref<1x1x8x128xf32, #tpu.memory_space<vmem>>, vector<1x1x8x128xf32>,
    return
  }
  func.func @transform_0(%arg0: i32, %arg1: i32, %arg2: i32) -> (i32, i32, i32, i32) {
    %c1_i32 = arith.constant 1 : i32
    %0 = arith.muli %arg1, %c1_i32 : i32
    %1 = arith.addi %0, %arg2 : i32
    %c0_i32 = arith.constant 0 : i32
    %c0_i32_0 = arith.constant 0 : i32
    %c0_i32_1 = arith.constant 0 : i32
    return %arg0, %c0_i32, %1, %c0_i32_0 : i32, i32, i32, i32
  }
  func.func @transform_1(%arg0: i32, %arg1: i32, %arg2: i32) -> (i32, i32, i32, i32) {
    %c1_i32 = arith.constant 1 : i32
    %0 = arith.muli %arg1, %c1_i32 : i32
    %1 = arith.addi %0, %arg2 : i32
    %c0_i32 = arith.constant 0 : i32
    %c0_i32_0 = arith.constant 0 : i32
    %c0_i32_1 = arith.constant 0 : i32
    return %arg0, %c0_i32, %1, %c0_i32_0 : i32, i32, i32, i32
  }
  func.func @transform_2(%arg0: i32, %arg1: i32, %arg2: i32) -> (i32, i32, i32, i32) {
    %c1_i32 = arith.constant 1 : i32
    %0 = arith.muli %arg1, %c1_i32 : i32
    %1 = arith.addi %0, %arg2 : i32
    %c0_i32 = arith.constant 0 : i32
    %c0_i32_0 = arith.constant 0 : i32
    %c0_i32_1 = arith.constant 0 : i32
    return %arg0, %c0_i32, %1, %c0_i32_0 : i32, i32, i32, i32
  }
  func.func @transform_3(%arg0: i32, %arg1: i32, %arg2: i32) -> (i32, i32, i32, i32) {
    %c0_i32 = arith.constant 0 : i32
    %c0_i32_0 = arith.constant 0 : i32
    %c0_i32_1 = arith.constant 0 : i32
    return %arg0, %arg1, %c0_i32, %c0_i32_0 : i32, i32, i32, i32
  }
}

</mosaic_0001>

<bundles_post_ra>
// kernel: tpu_custom_call.1
= control target key start
LH: loop header
LB: loop body
LE: loop exit
PB: predicated region body
PF: predicated region fallthrough
CT: control target
= control target key end

     0   :  { %s1194_s0 = inlined_call_operand.hbm [shape: f32[2,2,32,128], index: 0, kind: input, shape index: {}]   ;;  %s1195_s1 = inlined_call_operand.hbm [shape: f32[2,2,32,128], index: 1, kind: input, shape index: {}]   ;;  %s1196_s2 = inlined_call_operand.hbm [shape: f32[2,2,32,128], index: 2, kind: output, shape index: {0}]   ;;  %s1197_s3 = inlined_call_operand.hbm [shape: f32[2,1,8,128], index: 3, kind: output, shape index: {1}]  }
   0x1   :  { %1198 = sst [smem:[#allocation14_spill]] %s1194_s0 }
   0x2   :  { %9 = vsyncpa [#allocation3], 0 }
   0x3   :  { %11 = vsyncpa [#allocation3 + $0x1], 0 }
   0x4   :  { %12 = vsyncpa [#allocation6], 0 }
   0x5   :  { %14 = vsyncpa [#allocation6 + $0x1], 0 }
   0x6   :  { %15 = vsyncpa [#allocation4], 0 }
   0x7   :  { %17 = vsyncpa [#allocation4 + $0x1], 0 }
   0x8   :  { %18 = vsyncpa [#allocation9], 0 }
   0x9   :  { %20 = vsyncpa [#allocation9 + $0x1], 0  ;;  %s929_s12 = smov 0   ;;  %s931_s13 = smov 0  }
   0xa   :  { %s933_s14 = smov 0   ;;  %s935_s15 = smov 0  }
   0xb   :  { %s937_s16 = smov 0   ;;  %s939_s17 = smov 0  }
   0xc LB: > { %s591_s18 = sadd.s32 4294967295, %s899_s17   ;;  %s592_s19 = sadd.s32 4294967294, %s899_s17   ;;  %s899_s17 = sphi %s939_s17, %s26_s17   ;;  %s895_s16 = sphi %s937_s16, %s1211_s16   ;;  %s891_s15 = sphi %s935_s15, %s1210_s15   ;;  %s887_s14 = sphi %s933_s14, %s1209_s14   ;;  %s883_s13 = sphi %s931_s13, %s1208_s13   ;;  %s879_s12 = sphi %s929_s12, %s1207_s12  }
   0xd   : > { %s45_s20 = sadd.s32 1, %s895_s16  ;;  %s56_s21 = sadd.s32 1, %s887_s14 }
   0xe   : > { %p47_p0 = scmp.ge.s32.totalorder %s45_s20, 2  ;;  %p63_p1 = scmp.ne.s32.totalorder %s887_s14, %s883_s13 }
   0xf   : > { %p64_p2 = scmp.eq.s32.totalorder %s899_s17, 0  ;;  %p69_p3 = scmp.ne.s32.totalorder %s883_s13, %s879_s12 }
  0x10   : > { %s1213_s20 = smov (%p47_p0, %s45_s20), 0  ;;  %p70_p5 = scmp.eq.s32.totalorder %s591_s18, 0 }
  0x11   : > { %p970_p4 = por %p64_p2, %p63_p1  ;;  %s51_s23 = ssub.s32 %s895_s16, %s1213_s20 }
  0x12   : > { %p127_p6 = scmp.eq.s32.totalorder %s591_s18, 1  ;;  %p54_p7 = scmp.eq.s32.totalorder %s51_s23, 0 }
  0x13   : > { %p976_p8 = por %p70_p5, %p69_p3  ;;  %p133_p10 = scmp.eq.s32.totalorder %s592_s19, 1 }
  0x14   : > { %p980_p9 = por %p127_p6, %p63_p1  ;;  %p650_p13 = scmp.lt.s32.totalorder %s899_s17, 2 }
  0x15   : > { %s985_s26 = scalar_select %p54_p7, %s887_s14, %s56_s21  }
  0x16   : > { %p987_p11 = por %p133_p10, %p69_p3  ;;  %s994_s28 = sand.u32 1, %s887_s14  }
  0x17   : > { %s595_s29 = sshll.u32 %s994_s28, 6  ;;  %s625_s30 = sshll.u32 %s895_s16, 10 }
  0x18   : > { %s1203_s0 = sld [smem:[#allocation14_spill]]  ;;  %s185_s7 = scalar_lea.vmem [#allocation2], %s595_s29 }
  0x19   : > { %s195_s8 = sshll.u32 %s185_s7, 4  ;;  %p1007_p0 = pnand %p650_p13, %p970_p4  ;;  %s196_s8 = int_to_ptr.vmem [resolvable:$true] %s195_s8 }
  0x1a   : > { %p601_p1 = scmp.ge.s32.totalorder %s899_s17, 1  ;;  %s182_s10 = scalar_lea.sflag [#allocation3], %s994_s28 }
  0x1b   : > { %p731_p2 = pneg %p1007_p0  ;;  %s742_s11 = scalar_lea.vmem %s196_s8, 1024 }
  0x1c   : > { %p743_p3 = scmp.ne.s32.totalorder %s196_s8, %s742_s11  ;;  %s901_s18 = smov [#allocation2]  }
  0x1d   : > { %s747_s19 = sshll.u32 %s901_s18, 4  ;;  %s748_s19 = int_to_ptr.vmem [resolvable:$false] %s747_s19 }
  0x1e   : > { %s194_s6 = scalar_lea.hbm %s1203_s0, %s625_s30  ;;  %p745_p5 = pnand %p743_p3, %p731_p2 }
  0x1f   : > { %s749_s21 = scalar_lea.vmem %s748_s19, 2048  ;;  %p750_p4 = scmp.lt.s32.totalorder %s196_s8, %s748_s19 }
  0x20   : > { %p746_p6 = pneg %p745_p5  ;;  %p751_p7 = scmp.lt.s32.totalorder %s749_s21, %s742_s11 }
  0x22   : > { %p752_p10 = por %p751_p7, %p750_p4 }
  0x24   : > { %p753_p13 = pnand %p752_p10, %p746_p6 }
  0x26   : > { %756 = shalt.err (!%p753_p13)
}
  0x27   : > { %s902_s22 = smov 128   ;;  %s903_s23 = smov 8  }
  0x28   : > { %639 = dma.hbm_to_vmem [thread:$0]  (!%p1007_p0), %s194_s6, 1024, %s196_s8, %s182_s10, %s902_s22, %s902_s22, %s903_s23  }
  0x29   : > { %p227_p3 = scmp.lt.s32.totalorder %s899_s17, 3  ;;  %s218_s7 = scalar_lea.hbm %s1195_s1, %s625_s30 }
  0x2a   : > { %s209_s18 = scalar_lea.vmem [#allocation5], %s595_s29  ;;  %s206_s21 = scalar_lea.sflag [#allocation6], %s994_s28 }
  0x2b   : > { %p1028_p5 = pnand %p601_p1, %p227_p3  ;;  %s219_s19 = sshll.u32 %s209_s18, 4  ;;  %s220_s19 = int_to_ptr.vmem [resolvable:$true] %s219_s19 }
  0x2c   : > { %s770_s0 = scalar_lea.vmem %s220_s19, 1024  ;;  %s904_s6 = smov [#allocation5]  }
  0x2d   : > { %p771_p6 = scmp.ne.s32.totalorder %s220_s19, %s770_s0  ;;  %s775_s8 = sshll.u32 %s904_s6, 4  ;;  %s776_s8 = int_to_ptr.vmem [resolvable:$false] %s775_s8 }
  0x2e   : > { %s777_s30 = scalar_lea.vmem %s776_s8, 2048  ;;  %p778_p10 = scmp.lt.s32.totalorder %s220_s19, %s776_s8 }
  0x2f   : > { %p773_p4 = pnand %p771_p6, %p731_p2  ;;  %p779_p1 = scmp.lt.s32.totalorder %s777_s30, %s770_s0 }
  0x31   : > { %p774_p7 = pneg %p773_p4  ;;  %p780_p13 = por %p779_p1, %p778_p10 }
  0x33   : > { %p781_p3 = pnand %p780_p13, %p774_p7 }
  0x35   : > { %784 = shalt.err (!%p781_p3)
}
  0x36   : > { %642 = dma.hbm_to_vmem [thread:$0]  (!%p1007_p0), %s218_s7, 1024, %s220_s19, %s206_s21, %s902_s22, %s902_s22, %s903_s23  }
  0x37   : > { %231 = sbr.rel (%p1028_p5) target bundleno = 148 (0x94), region = 28  ;;  %s1043_s28 = sand.u32 (!%p1028_p5), 1, %s883_s13  }
  0x38   : > { %s1046_s29 = sshll.u32 (!%p1028_p5), %s1043_s28, 6  ;;  %s234_s10 = scalar_lea.sflag (!%p1028_p5), [#allocation3], %s1043_s28 }
  0x39   : > { %s237_s0 = scalar_lea.vmem (!%p1028_p5), [#allocation2], %s1046_s29 }
  0x3c   : > { %862 = dma.done.wait (%p976_p8), %s234_s10, 1024  }
  0x3d   : > { %864 = vsyncadd (%p976_p8), %s234_s10, 4294966272  ;;  %s243_s9 = scalar_lea.sflag [#allocation6], %s1043_s28  ;;  %s1056_s22 = scalar_lea.vmem [#allocation5], %s1046_s29 }
  0x3e   : > { %866 = dma.done.wait (%p976_p8), %s243_s9, 1024  }
  0x3f   : > { %868 = vsyncadd (%p976_p8), %s243_s9, 4294966272  ;;  %v290_v0 = vld [vmem:[%s237_s0] sm:$0xff]  ;;  %v291_v2 = vld [vmem:[%s237_s0 + $0x8] sm:$0xff]  ;;  %s1076_s24 = scalar_lea.vmem [#allocation7], %s1046_s29  ;;  %s627_s4 = sshll.u32 %s891_s15, 10 }
  0x40   : > { %v606_v1 = vld [vmem:[%s237_s0 + $0x20] sm:$0xff]  ;;  %v607_v4 = vld [vmem:[%s237_s0 + $0x28] sm:$0xff]  ;;  %v292_v5 = vld [vmem:[%s237_s0 + $0x10] sm:$0xff]  ;;  %s425_s23 = sshll.u32 %s1076_s24, 4  ;;  %s1109_s11 = scalar_lea.hbm %s1196_s2, %s627_s4  ;;  %s1085_s23 = int_to_ptr.vmem [resolvable:$true] %s425_s23 }
  0x41   : > { %v1062_v3 = vsub.f32 %v606_v1, %v290_v0  ;;  %v608_v6 = vld [vmem:[%s237_s0 + $0x30] sm:$0xff]  ;;  %v1064_v7 = vsub.f32 %v607_v4, %v291_v2  ;;  %v293_v9 = vld [vmem:[%s237_s0 + $0x18] sm:$0xff]  ;;  %v614_v47 = vld [vmem:[%s1056_s22 + $0x20] sm:$0xff]  ;;  %s404_s18 = scalar_lea.sflag [#allocation4], %s1043_s28  ;;  %s785_s19 = scalar_lea.vmem %s1085_s23, 1024 }
  0x42   : > { %v1066_v8 = vsub.f32 %v608_v6, %v292_v5  ;;  %v609_v10 = vld [vmem:[%s237_s0 + $0x38] sm:$0xff]  ;;  %v615_v53 = vld [vmem:[%s1056_s22 + $0x28] sm:$0xff]  ;;  %v372_v59 = vld [vmem:[%s1056_s22] sm:$0xff]  ;;  %v385_v4 = vmul.f32 4.0, %v614_v47  ;;  %p786_p8 = scmp.ne.s32.totalorder %s1085_s23, %s785_s19  ;;  %s905_s21 = smov [#allocation7]  }
  0x43   : > { %v303_v11 = vand.u32 2147483647, %v1062_v3  ;;  %v1069_v12 = vsub.f32 %v609_v10, %v293_v9  ;;  %v304_v13 = vand.u32 2147483647, %v1064_v7  ;;  %vm331_vm0 = vcmp.ge.f32.partialorder %v1062_v3, 0.0  ;;  %v616_v60 = vld [vmem:[%s1056_s22 + $0x30] sm:$0xff] }
  0x44   : > { %v305_v14 = vand.u32 2147483647, %v1066_v8  ;;  %vm332_vm1 = vcmp.ge.f32.partialorder %v1064_v7, 0.0  ;;  %v360_v36 = vmax.f32 %v1062_v3, 0.0  ;;  %vm333_vm2 = vcmp.ge.f32.partialorder %v1066_v8, 0.0  ;;  %v373_v0 = vld [vmem:[%s1056_s22 + $0x8] sm:$0xff]  ;;  %p787_p0 = pnand %p786_p8, %p980_p9 }
  0x45   : > { %v307_v15 = vsub.f32 0.0, %v303_v11  ;;  %v306_v16 = vand.u32 2147483647, %v1069_v12  ;;  %v308_v17 = vsub.f32 0.0, %v304_v13  ;;  %vm334_vm3 = vcmp.ge.f32.partialorder %v1069_v12, 0.0  ;;  %v374_v1 = vld [vmem:[%s1056_s22 + $0x10] sm:$0xff] }
  0x46   : > { %v309_v18 = vsub.f32 0.0, %v305_v14  ;;  %v361_v44 = vmax.f32 %v1064_v7, 0.0  ;;  %v362_v52 = vmax.f32 %v1066_v8, 0.0  ;;  %v363_v58 = vmax.f32 %v1069_v12, 0.0  ;;  %v617_v2 = vld [vmem:[%s1056_s22 + $0x38] sm:$0xff]  ;;  %p788_p2 = pneg %p787_p0  ;;  %s789_s6 = sshll.u32 %s905_s21, 4  ;;  %s790_s6 = int_to_ptr.vmem [resolvable:$false] %s789_s6 }
  0x47   : > { %v311_v19 = vmul.f32 1.442695, %v307_v15  ;;  %v310_v20 = vsub.f32 0.0, %v306_v16  ;;  %v313_v21 = vmul.f32 1.442695, %v308_v17  ;;  %v386_v9 = vmul.f32 4.0, %v615_v53  ;;  %p792_p5 = scmp.lt.s32.totalorder %s1085_s23, %s790_s6 }
  0x48   : > { %v315_v22 = vmul.f32 1.442695, %v309_v18  ;;  %s791_s8 = scalar_lea.vmem %s790_s6, 2048 }
  0x49   : > { %705 = vpow2.f32 %v311_v19  ;;  %v317_v23 = vmul.f32 1.442695, %v310_v20  ;;  %p793_p6 = scmp.lt.s32.totalorder %s791_s8, %s785_s19 }
  0x4a   : > { %707 = vpow2.f32 %v313_v21 }
  0x4b   : > { %709 = vpow2.f32 %v315_v22  ;;  %p794_p4 = por %p793_p6, %p792_p5 }
  0x4c   : > { %711 = vpow2.f32 %v317_v23 }
  0x4d   : > { %p795_p7 = pnand %p794_p4, %p788_p2 }
  0x56   : > { %v706_v24 = vpop.eup %705 }
  0x57   : > { %v708_v25 = vpop.eup %707  ;;  %v319_v26 = vadd.f32 1.0, %v706_v24 }
  0x58   : > { %v710_v27 = vpop.eup %709  ;;  %v320_v28 = vadd.f32 1.0, %v708_v25 }
  0x59   : > { %v712_v29 = vpop.eup %711  ;;  %713 = vrcp.f32 %v319_v26  ;;  %v321_v30 = vadd.f32 1.0, %v710_v27 }
  0x5a   : > { %715 = vrcp.f32 %v320_v28  ;;  %v322_v31 = vadd.f32 1.0, %v712_v29 }
  0x5b   : > { %717 = vrcp.f32 %v321_v30 }
  0x5c   : > { %719 = vrcp.f32 %v322_v31 }
  0x5d   : > { %721 = vlog2.f32 %v319_v26 }
  0x5e   : > { %723 = vlog2.f32 %v320_v28 }
  0x5f   : > { %725 = vlog2.f32 %v321_v30 }
  0x60   : > { %727 = vlog2.f32 %v322_v31 }
  0x66   : > { %v714_v32 = vpop.eup %713 }
  0x67   : > { %v716_v33 = vpop.eup %715  ;;  %v327_v34 = vmul.f32 %v714_v32, %v706_v24 }
  0x68   : > { %v718_v35 = vpop.eup %717  ;;  %v328_v37 = vmul.f32 %v716_v33, %v708_v25 }
  0x69   : > { %v720_v38 = vpop.eup %719  ;;  %v335_v39 = vsel %vm331_vm0, %v327_v34, %v714_v32  ;;  %v329_v40 = vmul.f32 %v718_v35, %v710_v27  ;;  %v343_v41 = vsel %vm331_vm0, %v714_v32, %v327_v34 }
  0x6a   : > { %v722_v42 = vpop.eup %721  ;;  %339 = vst [vmem:[%s1076_s24] sm:$0xff] %v335_v39  ;;  %v336_v43 = vsel %vm332_vm1, %v328_v37, %v716_v33  ;;  %v330_v45 = vmul.f32 %v720_v38, %v712_v29  ;;  %610 = vst [vmem:[%s1076_s24 + $0x20] sm:$0xff] %v343_v41  ;;  %v344_v46 = vsel %vm332_vm1, %v716_v33, %v328_v37 }
  0x6b   : > { %v724_v48 = vpop.eup %723  ;;  %340 = vst [vmem:[%s1076_s24 + $0x8] sm:$0xff] %v336_v43  ;;  %v337_v49 = vsel %vm333_vm2, %v329_v40, %v718_v35  ;;  %611 = vst [vmem:[%s1076_s24 + $0x28] sm:$0xff] %v344_v46  ;;  %v345_v50 = vsel %vm333_vm2, %v718_v35, %v329_v40  ;;  %v353_v51 = vmul.f32 0.6931472, %v722_v42 }
  0x6c   : > { %v726_v54 = vpop.eup %725  ;;  %341 = vst [vmem:[%s1076_s24 + $0x10] sm:$0xff] %v337_v49  ;;  %v338_v55 = vsel %vm334_vm3, %v330_v45, %v720_v38  ;;  %612 = vst [vmem:[%s1076_s24 + $0x30] sm:$0xff] %v345_v50  ;;  %v346_v56 = vsel %vm334_vm3, %v720_v38, %v330_v45  ;;  %v355_v57 = vmul.f32 0.6931472, %v724_v48 }
  0x6d   : > { %v728_v61 = vpop.eup %727  ;;  %342 = vst [vmem:[%s1076_s24 + $0x18] sm:$0xff] %v338_v55  ;;  %613 = vst [vmem:[%s1076_s24 + $0x38] sm:$0xff] %v346_v56  ;;  %v357_v62 = vmul.f32 0.6931472, %v726_v54  ;;  %v364_v63 = vadd.f32 %v360_v36, %v353_v51 }
  0x6e   : > { %v359_v5 = vmul.f32 0.6931472, %v728_v61  ;;  %v365_v6 = vadd.f32 %v361_v44, %v355_v57 }
  0x6f   : > { %798 = shalt.err (!%p795_p7)
}
  0x70   : > { %s799_s30 = scalar_lea.hbm %s1109_s11, 1024  ;;  %s803_s0 = scalar_lea.hbm %s1196_s2, 2048 }
  0x71   : > { %p800_p10 = scmp.ne.s32.totalorder %s1109_s11, %s799_s30  ;;  %p804_p3 = scmp.lt.s32.totalorder %s1109_s11, %s1196_s2 }
  0x72   : > { %p805_p8 = scmp.lt.s32.totalorder %s803_s0, %s799_s30 }
  0x73   : > { %p801_p1 = pnand %p800_p10, %p980_p9 }
  0x74   : > { %p806_p0 = por %p805_p8, %p804_p3 }
  0x75   : > { %p802_p13 = pneg %p801_p1 }
  0x77   : > { %p807_p2 = pnand %p806_p0, %p802_p13 }
  0x79   : > { %810 = shalt.err (!%p807_p2)
}
  0x7a   : > { %s906_s4 = smov 128   ;;  %s907_s5 = smov 8   ;;  %v366_v10 = vadd.f32 %v362_v52, %v357_v62  ;;  %v368_v11 = vsub.f32 %v364_v63, %v1062_v3  ;;  %v375_v13 = vld [vmem:[%s1056_s22 + $0x18] sm:$0xff]  ;;  %v381_v14 = vmul.f32 %v372_v59, %v364_v63  ;;  %v387_v15 = vmul.f32 4.0, %v616_v60 }
  0x7b   : > { %632 = dma.vmem_to_hbm [thread:$0]  (%p980_p9), %s1085_s23, 1024, %s1109_s11, %s404_s18, %s906_s4, %s906_s4, %s907_s5   ;;  %v367_v16 = vadd.f32 %v363_v58, %v359_v5  ;;  %v369_v17 = vsub.f32 %v365_v6, %v1064_v7  ;;  %v382_v18 = vmul.f32 %v373_v0, %v365_v6  ;;  %v388_v19 = vmul.f32 4.0, %v617_v2 }
  0x7c   : > { %v370_v20 = vsub.f32 %v366_v10, %v1066_v8  ;;  %v383_v21 = vmul.f32 %v374_v1, %v366_v10  ;;  %v389_v22 = vmul.f32 %v385_v4, %v368_v11  ;;  %s605_s23 = sshll.u32 %s1043_s28, 3  ;;  %s622_s22 = sshll.u32 %s891_s15, 7 }
  0x7d   : > { %v371_v23 = vsub.f32 %v367_v16, %v1069_v12  ;;  %v384_v24 = vmul.f32 %v375_v13, %v367_v16  ;;  %v390_v25 = vmul.f32 %v386_v9, %v369_v17  ;;  %s278_s7 = scalar_lea.vmem [#allocation8], %s605_s23  ;;  %s440_s21 = scalar_lea.hbm %s1197_s3, %s622_s22 }
  0x7e   : > { %v391_v3 = vmul.f32 %v387_v15, %v370_v20  ;;  %v393_v26 = vadd.f32 %v389_v22, %v381_v14  ;;  %s442_s11 = sshll.u32 %s278_s7, 4  ;;  %s409_s6 = scalar_lea.sflag [#allocation9], %s1043_s28  ;;  %s443_s11 = int_to_ptr.vmem [resolvable:$true] %s442_s11 }
  0x7f   : > { %v392_v27 = vmul.f32 %v388_v19, %v371_v23  ;;  %v394_v28 = vadd.f32 %v390_v25, %v382_v18  ;;  %s811_s8 = scalar_lea.vmem %s443_s11, 128  ;;  %s908_s30 = smov [#allocation8]  }
  0x80   : > { %v395_v29 = vadd.f32 %v391_v3, %v383_v21  ;;  %p812_p5 = scmp.ne.s32.totalorder %s443_s11, %s811_s8  ;;  %s815_s29 = sshll.u32 %s908_s30, 4  ;;  %s816_s29 = int_to_ptr.vmem [resolvable:$false] %s815_s29 }
  0x81   : > { %v396_v7 = vadd.f32 %v392_v27, %v384_v24  ;;  %v398_v30 = vadd.f32 %v394_v28, %v393_v26  ;;  %s817_s10 = scalar_lea.vmem %s816_s29, 256  ;;  %p818_p7 = scmp.lt.s32.totalorder %s443_s11, %s816_s29 }
  0x82   : > { %p813_p6 = pnand %p812_p5, %p980_p9  ;;  %p819_p10 = scmp.lt.s32.totalorder %s817_s10, %s811_s8 }
  0x83   : > { %v399_v31 = vadd.f32 %v398_v30, %v395_v29 }
  0x84   : > { %p814_p4 = pneg %p813_p6  ;;  %p820_p1 = por %p819_p10, %p818_p7 }
  0x85   : > { %v400_v8 = vadd.f32 %v399_v31, %v396_v7 }
  0x86   : > { %p821_p13 = pnand %p820_p1, %p814_p4 }
  0x87   : > { %402 = vst [vmem:[%s278_s7] sm:$0xff] %v400_v8 }
  0x88   : > { %824 = shalt.err (!%p821_p13)
}
  0x89   : > { %s825_s15 = scalar_lea.hbm %s440_s21, 128  ;;  %s829_s9 = scalar_lea.hbm %s1197_s3, 256 }
  0x8a   : > { %p826_p3 = scmp.ne.s32.totalorder %s440_s21, %s825_s15  ;;  %p830_p2 = scmp.lt.s32.totalorder %s440_s21, %s1197_s3 }
  0x8b   : > { %p831_p5 = scmp.lt.s32.totalorder %s829_s9, %s825_s15 }
  0x8c   : > { %p827_p8 = pnand %p826_p3, %p980_p9 }
  0x8d   : > { %p832_p6 = por %p831_p5, %p830_p2 }
  0x8e   : > { %p828_p0 = pneg %p827_p8 }
  0x90   : > { %p833_p12 = pnand %p832_p6, %p828_p0 }
  0x92   : > { %836 = shalt.err (!%p833_p12)
}
  0x93   : > { %633 = dma.vmem_to_hbm [thread:$0]  (%p980_p9), %s443_s11, 128, %s440_s21, %s409_s6  }
  0x94 PF: > { %s454_s5 = sand.u32 1, %s879_s12   ;;  %p1206_p4 = scmp.ge.s32.totalorder %s899_s17, 2 }
  0x95   : > { %s455_s23 = scalar_lea.sflag [#allocation4], %s454_s5 }
  0x96   : > { %p644_p7 = pnand %p1206_p4, %p987_p11 }
  0x98   : > { %p645_p10 = pneg %p644_p7 }
  0x9a   : > { %870 = dma.done.wait (%p645_p10), %s455_s23, 1024  }
  0x9b   : > { %872 = vsyncadd (%p645_p10), %s455_s23, 4294966272  ;;  %s464_s22 = scalar_lea.sflag [#allocation9], %s454_s5 }
  0x9c   : > { %874 = dma.done.wait (%p645_p10), %s464_s22, 128  }
  0x9d   : > { %876 = vsyncadd (%p645_p10), %s464_s22, 4294967168  ;;  %s26_s17 = sadd.s32 1, %s899_s17   ;;  %s1207_s12 = smov %s883_s13 }
  0x9e   : > { %p23_p12 = scmp.ge.s32.totalorder %s26_s17, 4   ;;  %s1208_s13 = smov %s887_s14 }
  0x9f   : > { %s1209_s14 = smov %s985_s26  ;;  %s1210_s15 = smov %s895_s16 }
  0xa0   : > { %s1211_s16 = smov %s1213_s20  ;;  %25 = sbr.rel (!%p23_p12) target bundleno = 12 (0xc), region = 110 }
  0xa5   :  { %469 = vsyncpa [#allocation3], 1 }
  0xa6   :  { %471 = vsyncpa [#allocation3 + $0x1], 1 }
  0xa7   :  { %472 = vsyncpa [#allocation6], 1 }
  0xa8   :  { %474 = vsyncpa [#allocation6 + $0x1], 1 }
  0xa9   :  { %475 = vsyncpa [#allocation4], 1 }
  0xaa   :  { %477 = vsyncpa [#allocation4 + $0x1], 1 }
  0xab   :  { %478 = vsyncpa [#allocation9], 1 }
  0xac   :  { %480 = vsyncpa [#allocation9 + $0x1], 1 }

</bundles_post_ra>
